<compile_context>
chip_gen: v7x
topology: tpu7x:2x2x1
jax: 0.10.0
libtpu: 0.0.40
codegen_flags: <defaults>
</compile_context>

<pallas_src>
import functools

import jax
import jax.numpy as jnp
from jax.experimental import pallas as pl
from jax.experimental.pallas import tpu as pltpu


def _round_up(x, m):
    return ((x + m - 1) // m) * m


def _cdiv(a, b):
    return -(-a // b)


def _vmem_capacity_bytes():
    try:
        return int(pltpu.get_tpu_info().vmem_capacity_bytes)
    except Exception:
        return 64 << 20  # conservative (v7x per-TC VMEM)


# ----------------------------------------------------------------------------
# Kernels
# ----------------------------------------------------------------------------
def _linear_resident_kernel(x_ref, w_ref, b_ref, o_ref, *, compute_dtype=None):
    """Whole weight resident in VMEM: one MXU matmul + bias per batch tile."""
    x = x_ref[...]
    if compute_dtype is not None:
        x = x.astype(compute_dtype)  # in-kernel cast (no extra HBM pass on x)
    o_ref[...] = (
        jnp.dot(x, w_ref[...], preferred_element_type=jnp.float32) + b_ref[...]
    ).astype(o_ref.dtype)


def _linear_ktiled_kernel(x_ref, w_ref, b_ref, o_ref, acc_ref, *, compute_dtype=None):
    """Fallback for very large F: K-accumulation in an f32 VMEM scratch."""
    k = pl.program_id(1)

    @pl.when(k == 0)
    def _init():
        acc_ref[...] = jnp.zeros_like(acc_ref)

    x = x_ref[...]
    if compute_dtype is not None:
        x = x.astype(compute_dtype)
    acc_ref[...] += jnp.dot(x, w_ref[...], preferred_element_type=jnp.float32)

    @pl.when(k == pl.num_programs(1) - 1)
    def _finalize():
        o_ref[...] = (acc_ref[...] + b_ref[...]).astype(o_ref.dtype)


# ----------------------------------------------------------------------------
# Wrapper
# ----------------------------------------------------------------------------
def _pick_tk(F, max_tk):
    """Largest K tile <= max_tk that divides F exactly (avoids padding x along K)."""
    top = min(max_tk, F)
    for align in (256, 128, 8):
        t = (top // align) * align
        while t >= align:
            if F % t == 0:
                return t, F
            t -= align
    return max_tk, _round_up(F, max_tk)  # no clean divisor: pad K (rare, tiny %)


def _pick_batch_tiling(B, tb_cap, align_b):
    """Balanced batch tiles: padding bounded to < align_b rows per tile."""
    ntiles = _cdiv(B, tb_cap)
    if B > align_b:
        ntiles = max(ntiles, 2)  # v7x megacore: both TensorCores get work
    if ntiles == 1:
        return B, B, 1           # full-extent block: no batch padding, no x copy
    TB = _round_up(_cdiv(B, ntiles), align_b)
    return TB, TB * ntiles, ntiles


def softmax_regression_forward(x, w_t, b, *, compute_dtype=None,
                               max_tb=1024, max_tk=512,
                               max_resident_weight_bytes=24 << 20):
    """x: (B, F), w_t: (F, O) (transposed torch weight), b: (O,) -> logits (B, O)."""
    B, F = x.shape
    F_w, O = w_t.shape
    assert F == F_w, "weight / input feature mismatch"
    out_dtype = x.dtype

    # Only the (tiny) weight is cast in the wrapper; x is cast inside the kernel.
    if compute_dtype is not None:
        w_t = w_t.astype(compute_dtype)

    x_item = jnp.dtype(x.dtype).itemsize
    w_item = jnp.dtype(w_t.dtype).itemsize
    o_item = jnp.dtype(out_dtype).itemsize
    compute_item = jnp.dtype(compute_dtype).itemsize if compute_dtype is not None else x_item
    align_b = 16 if compute_item == 2 else (32 if compute_item == 1 else 8)

    # Lane-dense output: pad out_features to a multiple of 128.
    O_pad = _round_up(O, 128)
    b2d = jnp.pad(b, (0, O_pad - O)).reshape(1, O_pad).astype(jnp.float32)

    vmem_cap = _vmem_capacity_bytes()
    budget = int(vmem_cap * 0.6)          # leave headroom (v7x: ~38 of 64 MiB)
    tb_start = max(align_b, (max_tb // align_b) * align_b)

    weight_bytes = F * O_pad * w_item
    resident = weight_bytes <= min(max_resident_weight_bytes, budget // 2)

    if resident:
        # ---------------- resident-weight path: grid = (batch_tiles,) ----------------
        def tile_bytes(tb):
            return (2 * tb * F * x_item        # double-buffered x tile
                    + 2 * tb * O_pad * o_item  # double-buffered out tile
                    + O_pad * 4)               # bias

        tb_cap = tb_start
        while tb_cap > align_b and weight_bytes + tile_bytes(tb_cap) > budget:
            tb_cap = max(align_b, ((tb_cap // 2) // align_b) * align_b)

        TB, B_pad, _ = _pick_batch_tiling(B, tb_cap, align_b)

        if B_pad != B:
            x = jnp.pad(x, ((0, B_pad - B), (0, 0)))   # < align_b rows per tile
        if O_pad != O:
            w_t = jnp.pad(w_t, ((0, 0), (0, O_pad - O)))

        vmem_limit = int(min(max(weight_bytes + tile_bytes(TB) + (8 << 20), 32 << 20),
                             vmem_cap - (4 << 20)))

        logits_padded = pl.pallas_call(
            functools.partial(_linear_resident_kernel, compute_dtype=compute_dtype),
            out_shape=jax.ShapeDtypeStruct((B_pad, O_pad), out_dtype),
            grid_spec=pltpu.PrefetchScalarGridSpec(
                num_scalar_prefetch=0,
                grid=(B_pad // TB,),
                in_specs=[
                    pl.BlockSpec((TB, F), lambda i: (i, 0)),      # streamed x tile
                    pl.BlockSpec((F, O_pad), lambda i: (0, 0)),   # resident weight
                    pl.BlockSpec((1, O_pad), lambda i: (0, 0)),   # resident bias
                ],
                out_specs=pl.BlockSpec((TB, O_pad), lambda i: (i, 0)),
            ),
            compiler_params=pltpu.CompilerParams(
                dimension_semantics=("parallel",),
                vmem_limit_bytes=vmem_limit,
            ),
        )(x, w_t, b2d)

    else:
        # ---------------- huge-F fallback: K-tiled accumulator ----------------
        TK, F_pad = _pick_tk(F, max_tk)

        def tile_bytes_k(tb):
            return (3 * tb * TK * x_item        # 3-deep x buffer
                    + 2 * TK * O_pad * w_item   # double-buffered weight tile
                    + 2 * tb * O_pad * o_item   # double-buffered out tile
                    + tb * O_pad * 4            # f32 accumulator
                    + O_pad * 4)                # bias

        tb_cap = tb_start
        while tb_cap > align_b and tile_bytes_k(tb_cap) > budget:
            tb_cap = max(align_b, ((tb_cap // 2) // align_b) * align_b)

        TB, B_pad, _ = _pick_batch_tiling(B, tb_cap, align_b)

        if B_pad != B or F_pad != F:
            # K padding must stay explicit (zeros contribute nothing to the dot).
            x = jnp.pad(x, ((0, B_pad - B), (0, F_pad - F)))
        if F_pad != F or O_pad != O:
            w_t = jnp.pad(w_t, ((0, F_pad - F), (0, O_pad - O)))

        vmem_limit = int(min(max(tile_bytes_k(TB) + (8 << 20), 32 << 20),
                             vmem_cap - (4 << 20)))

        logits_padded = pl.pallas_call(
            functools.partial(_linear_ktiled_kernel, compute_dtype=compute_dtype),
            out_shape=jax.ShapeDtypeStruct((B_pad, O_pad), out_dtype),
            grid_spec=pltpu.PrefetchScalarGridSpec(
                num_scalar_prefetch=0,
                grid=(B_pad // TB, F_pad // TK),
                in_specs=[
                    pl.BlockSpec((TB, TK), lambda i, k: (i, k),
                                 pipeline_mode=pl.Buffered(3)),     # streamed x
                    pl.BlockSpec((TK, O_pad), lambda i, k: (k, 0)),  # weight tile
                    pl.BlockSpec((1, O_pad), lambda i, k: (0, 0)),   # bias
                ],
                out_specs=pl.BlockSpec((TB, O_pad), lambda i, k: (i, 0)),
                scratch_shapes=[pltpu.VMEM((TB, O_pad), jnp.float32)],
            ),
            compiler_params=pltpu.CompilerParams(
                dimension_semantics=("parallel", "arbitrary"),
                vmem_limit_bytes=vmem_limit,
            ),
        )(x, w_t, b2d)

    # Slice away batch/output padding (must happen before any argmax).
    return logits_padded[:B, :O]


def predict(x, w_t, b):
    """Mirrors SoftmaxRegression.predict: (logits, argmax over classes)."""
    logits = softmax_regression_forward(x, w_t, b)
    return logits, jnp.argmax(logits, axis=1)


# TODO(synk): predict_label is a Python dict lookup (int -> class name); it has
# no tensor computation and stays outside the kernel.


if __name__ == "__main__":
    # Small shapes consistent with the module: flattened features -> 10 classes.
    batch = 8
    in_features = 32
    out_features = 10

    key = jax.random.PRNGKey(0)
    kx, kw, kb = jax.random.split(key, 3)

    x = jax.random.normal(kx, (batch, in_features), dtype=jnp.float32)
    # PyTorch-style uniform(-1/sqrt(F), 1/sqrt(F)) init.
    bound = 1.0 / (in_features ** 0.5)
    w = jax.random.uniform(kw, (out_features, in_features),
                           minval=-bound, maxval=bound, dtype=jnp.float32)
    b = jax.random.uniform(kb, (out_features,),
                           minval=-bound, maxval=bound, dtype=jnp.float32)

    w_t = w.T  # (in_features, out_features) for the kernel

    logits, labels = predict(x, w_t, b)
    jax.block_until_ready((logits, labels))

    # Reference check against plain JAX (x @ W.T + b).
    ref = x @ w.T + b
    assert logits.shape == (batch, out_features)
    assert jnp.allclose(logits, ref, atol=1e-5, rtol=1e-5)
    assert jnp.array_equal(labels, jnp.argmax(ref, axis=1))

    print("KERNEL_OK")
</pallas_src>

<mosaic_0001>
module attributes {stable_mosaic.version = 11 : i64} {
  func.func @_linear_resident_kernel(%arg0: i32, %arg1: memref<8x32xf32, #tpu.memory_space<vmem>>, %arg2: memref<32x128xf32, #tpu.memory_space<vmem>>, %arg3: memref<1x128xf32, #tpu.memory_space<vmem>>, %arg4: memref<8x128xf32, #tpu.memory_space<vmem>>) attributes {dimension_semantics = [#tpu.dimension_semantics<parallel>], iteration_bounds = array<i64: 1>, scalar_prefetch = 0 : i64, scratch_operands = 0 : i64, tpu.core_type = #tpu.core_type<tc>, window_params = [{transform_indices = @transform_0, window_bounds = array<i64: 8, 32>}, {pipeline_mode = #tpu.pipeline_mode<synchronous>, transform_indices = @transform_1, window_bounds = array<i64: 32, 128>}, {pipeline_mode = #tpu.pipeline_mode<synchronous>, transform_indices = @transform_2, window_bounds = array<i64: 1, 128>}, {transform_indices = @transform_3, window_bounds = array<i64: 8, 128>}]} {
    %c0 = arith.constant 0 : index
    %c0_0 = arith.constant 0 : index
    %0 = vector.load %arg1[%c0, %c0_0] : memref<8x32xf32, #tpu.memory_space<vmem>>, vector<8x32xf32>
    %c0_1 = arith.constant 0 : index
    %c0_2 = arith.constant 0 : index
    %1 = vector.load %arg2[%c0_1, %c0_2] : memref<32x128xf32, #tpu.memory_space<vmem>>, vector<32x128xf32>
    %cst = arith.constant dense<0.000000e+00> : vector<8x128xf32>
    %2 = tpu.matmul %0, %1, %cst {dimension_numbers = #tpu.dot_dimension_numbers<[1], [0], [0], [1], [0, 0, 1, 1], [], []>} : vector<8x32xf32>, vector<32x128xf32>, vector<8x128xf32> -> vector<8x128xf32>
    %c0_3 = arith.constant 0 : index
    %c0_4 = arith.constant 0 : index
    %3 = vector.load %arg3[%c0_3, %c0_4] : memref<1x128xf32, #tpu.memory_space<vmem>>, vector<1x128xf32>
    %4 = vector.broadcast %3 : vector<1x128xf32> to vector<8x128xf32>
    %5 = arith.addf %2, %4 : vector<8x128xf32>
    %c0_5 = arith.constant 0 : index
    %c0_6 = arith.constant 0 : index
    %6 = vector.load %arg4[%c0_5, %c0_6] : memref<8x128xf32, #tpu.memory_space<vmem>>, vector<8x128xf32>
    tpu.vector_store %arg4[%c0_5, %c0_6], %5 {strides = array<i32>} : memref<8x128xf32, #tpu.memory_space<vmem>>, vector<8x128xf32>,
    return
  }
  func.func @transform_0(%arg0: i32) -> (i32, i32) {
    %c0_i32 = arith.constant 0 : i32
    %c0_i32_0 = arith.constant 0 : i32
    return %arg0, %c0_i32 : i32, i32
  }
  func.func @transform_1(%arg0: i32) -> (i32, i32) {
    %c0_i32 = arith.constant 0 : i32
    %c0_i32_0 = arith.constant 0 : i32
    %c0_i32_1 = arith.constant 0 : i32
    return %c0_i32, %c0_i32_0 : i32, i32
  }
  func.func @transform_2(%arg0: i32) -> (i32, i32) {
    %c0_i32 = arith.constant 0 : i32
    %c0_i32_0 = arith.constant 0 : i32
    %c0_i32_1 = arith.constant 0 : i32
    return %c0_i32, %c0_i32_0 : i32, i32
  }
  func.func @transform_3(%arg0: i32) -> (i32, i32) {
    %c0_i32 = arith.constant 0 : i32
    %c0_i32_0 = arith.constant 0 : i32
    return %arg0, %c0_i32 : i32, i32
  }
}

</mosaic_0001>

<bundles_post_ra>
// kernel: tpu_custom_call.1
= control target key start
LH: loop header
LB: loop body
LE: loop exit
PB: predicated region body
PF: predicated region fallthrough
CT: control target
= control target key end

     0   :  { %8 = vsyncpa [#allocation3], 0  ;;  %s322_s0 = inlined_call_operand.hbm [shape: f32[8,32], index: 0, kind: input, shape index: {}]   ;;  %s323_s1 = inlined_call_operand.hbm [shape: f32[32,128], index: 1, kind: input, shape index: {}]   ;;  %s324_s2 = inlined_call_operand.vmem [shape: f32[1,128], index: 2, kind: input, shape index: {}]   ;;  %s325_s3 = inlined_call_operand.hbm [shape: f32[8,128], index: 3, kind: output, shape index: {}]  }
   0x1   :  { %9 = vsyncpa [#allocation6], 0 }
   0x2   :  { %10 = vsyncpa [#allocation4], 0  ;;  %s248_s12 = smov [#allocation2]   ;;  %s249_s14 = smov [#allocation5]  }
   0x3   :  { %s17_s13 = sshll.u32 %s248_s12, 4  ;;  %s26_s15 = sshll.u32 %s249_s14, 4  ;;  %s18_s13 = int_to_ptr.vmem [resolvable:$true] %s17_s13  ;;  %s276_s15 = int_to_ptr.vmem [resolvable:$true] %s26_s15 }
   0x4   :  { %s176_s18 = scalar_lea.hbm %s322_s0, 128 }
   0x5   :  { %p177_p0 = scmp.ne.s32.totalorder %s322_s0, %s176_s18  ;;  %p180_p1 = scmp.lt.u32.totalorder %s176_s18, %s322_s0 }
   0x7   :  { %p182_p2 = pnand %p180_p1, %p177_p0 }
   0x9   :  { %185 = shalt.err (!%p182_p2)
}
   0xa   :  { %s186_s23 = scalar_lea.vmem %s18_s13, 128  ;;  %p191_p4 = scmp.lt.s32.totalorder %s18_s13, %s18_s13 }
   0xb   :  { %p187_p3 = scmp.ne.s32.totalorder %s18_s13, %s186_s23  ;;  %p192_p5 = scmp.lt.s32.totalorder %s186_s23, %s186_s23 }
   0xd   :  { %p193_p6 = por %p192_p5, %p191_p4 }
   0xf   :  { %p194_p7 = pnand %p193_p6, %p187_p3 }
  0x11   :  { %197 = shalt.err (!%p194_p7)
}
  0x12   :  { %20 = dma.hbm_to_vmem [thread:$0]  %s322_s0, 128, %s18_s13, [#allocation3]  }
  0x13   :  { %s198_s28 = scalar_lea.hbm %s323_s1, 512 }
  0x14   :  { %p199_p8 = scmp.ne.s32.totalorder %s323_s1, %s198_s28  ;;  %p202_p9 = scmp.lt.u32.totalorder %s198_s28, %s323_s1 }
  0x16   :  { %p204_p10 = pnand %p202_p9, %p199_p8 }
  0x18   :  { %207 = shalt.err (!%p204_p10)
}
  0x19   :  { %s208_s6 = scalar_lea.vmem %s276_s15, 512  ;;  %p213_p12 = scmp.lt.s32.totalorder %s276_s15, %s276_s15 }
  0x1a   :  { %p209_p11 = scmp.ne.s32.totalorder %s276_s15, %s208_s6  ;;  %p214_p13 = scmp.lt.s32.totalorder %s208_s6, %s208_s6 }
  0x1c   :  { %p215_p0 = por %p214_p13, %p213_p12 }
  0x1e   :  { %p216_p1 = pnand %p215_p0, %p209_p11 }
  0x20   :  { %219 = shalt.err (!%p216_p1)
}
  0x21   :  { %s250_s0 = smov 128   ;;  %s251_s7 = smov 8  }
  0x22   :  { %32 = dma.hbm_to_vmem [thread:$0]  %s323_s1, 512, %s276_s15, [#allocation6], %s250_s0, %s250_s0, %s251_s7  }
  0x23   :  { %242 = dma.done.wait [#allocation3], 128  }
  0x24   :  { %243 = vsyncadd [#allocation3], 4294967168 }
  0x25   :  { %244 = dma.done.wait [#allocation6], 512  }
  0x26   :  { %245 = vsyncadd [#allocation6], 4294966784  ;;  %v252_v0 = vmov 0.0|0.0   ;;  %vm253_vm0 = vmmov 0   ;;  %v254_v1 = vmov 0.0   ;;  %v42_v2 = vld [vmem:[#allocation5] sm:$0xff] }
  0x27   :  { %162 = vmatprep.subr.bf16.mxu0 %v252_v0  ;;  %159 = vmatprep.mubr.msk.f32.mxu0 %vm253_vm0, %v254_v1  ;;  %v43_v3 = vld [vmem:[#allocation5 + $0x8] sm:$0xff]  ;;  %v44_v4 = vld [vmem:[#allocation5 + $0x10] sm:$0xff]  ;;  %v45_v6 = vld [vmem:[#allocation5 + $0x18] sm:$0xff]  ;;  %vm53_vm1 = vcmask 261120   ;;  %s255_s11 = smov [#allocation7]  }
  0x28   :  { %v163_v5 = vpack.c.bf16 %v43_v3, %v42_v2  ;;  %v166_v7 = vpack.c.bf16 %v45_v6, %v44_v4  ;;  %v41_v8 = vld [vmem:[#allocation2] sm:$0xff]  ;;  %s134_s12 = sshll.u32 %s255_s11, 4  ;;  %s135_s12 = int_to_ptr.vmem [resolvable:$true] %s134_s12 }
  0x29   :  { %v144_v9 = vld [vmem:[%s324_s2] ss:$0 sm:$0xff]  ;;  %s220_s13 = scalar_lea.vmem %s135_s12, 128  ;;  %p225_p3 = scmp.lt.s32.totalorder %s135_s12, %s135_s12 }
  0x2a   :  { %164 = vmatpush3.bf16.msra.mxu0 %v163_v5  ;;  %p221_p2 = scmp.ne.s32.totalorder %s135_s12, %s220_s13  ;;  %p226_p4 = scmp.lt.s32.totalorder %s220_s13, %s220_s13 }
  0x2b   :  { %165 = vmatprep.subr.bf16.mxu0 %v252_v0 }
  0x2c   :  { %p227_p5 = por %p226_p4, %p225_p3 }
  0x2e   :  { %167 = vmatpush3.bf16.msra.mxu0 %v166_v7  ;;  %p228_p6 = pnand %p227_p5, %p221_p2 }
  0x31   :  { %160 = vmatmul.mubr.msk.f32.vlgmr.msra.gmra.mrb[0].mxu0 %vm53_vm1, %v41_v8 }
 0x104   :  { %v123_v10 = vpop.f32.mrb[0].mxu0 }
 0x105   :  { %v124_v11 = vadd.f32 %v144_v9, %v123_v10  ;;  %v161_v12 = vpop.f32.mrb[1].mxu0 }
 0x107   :  { %127 = vst [vmem:[#allocation7] sm:$0xff] %v124_v11 }
 0x108   :  { %231 = shalt.err (!%p228_p6)
}
 0x109   :  { %s232_s16 = scalar_lea.hbm %s325_s3, 128 }
 0x10a   :  { %p233_p7 = scmp.ne.s32.totalorder %s325_s3, %s232_s16  ;;  %p236_p8 = scmp.lt.u32.totalorder %s232_s16, %s325_s3 }
 0x10c   :  { %p238_p9 = pnand %p236_p8, %p233_p7 }
 0x10e   :  { %241 = shalt.err (!%p238_p9)
}
 0x10f   :  { %137 = dma.vmem_to_hbm [thread:$0]  %s135_s12, 128, %s325_s3, [#allocation4]  }
 0x110   :  { %246 = dma.done.wait [#allocation4], 128  }
 0x111   :  { %247 = vsyncadd [#allocation4], 4294967168 }
 0x112   :  { %141 = vsyncpa [#allocation3], 1 }
 0x113   :  { %142 = vsyncpa [#allocation6], 1 }
 0x114   :  { %143 = vsyncpa [#allocation4], 1 }

</bundles_post_ra>
